<compile_context>
chip_gen: v5e
topology: v5e:2x2
jax: 0.10.0
libtpu: 0.0.40
codegen_flags: <defaults>
</compile_context>

<pallas_src>
import functools

import jax
import jax.numpy as jnp
from jax import lax
from jax.experimental import pallas as pl
from jax.experimental.pallas import tpu as pltpu

_LANES = 128


def _decode_features_kernel(x_ref, w1_ref, b1_ref, w2_ref, b2_ref, o_ref,
                            *, chunk, slope):
    # x_ref : (1, C_in, ROWS_TILE, 128)   VMEM  — pixels dense on (sublane, lane)
    # w1_ref: (C_in*C_in,)                SMEM  — row-major (c_out, c_in) flat
    # b1_ref: (C_in,)                     SMEM
    # w2_ref: (C_out*C_in,)               SMEM  — row-major (c_out, c_in) flat
    # b2_ref: (C_out,)                    SMEM
    # o_ref : (1, C_out, ROWS_TILE, 128)  VMEM
    c_in = x_ref.shape[1]
    c_out = o_ref.shape[1]
    rows = x_ref.shape[2]

    # Hoist all SMEM scalar reads out of the chunk loop (once per grid step).
    w1 = [[w1_ref[c * c_in + k] for k in range(c_in)] for c in range(c_in)]
    b1 = [b1_ref[c] for c in range(c_in)]
    w2 = [[w2_ref[c * c_in + k] for k in range(c_in)] for c in range(c_out)]
    b2 = [b2_ref[c] for c in range(c_out)]

    def do_rows(r0, nrows):
        # Dense (nrows, 128) slabs per channel — full vreg packing.
        xs = [x_ref[0, k, pl.ds(r0, nrows), :] for k in range(c_in)]
        hs = []
        for c in range(c_in):
            acc = b1[c] + w1[c][0] * xs[0]
            for k in range(1, c_in):
                acc = acc + w1[c][k] * xs[k]
            hs.append(jnp.maximum(acc, slope * acc))     # LeakyReLU(0.4)
        for c in range(c_out):
            acc = b2[c] + w2[c][0] * hs[0]
            for k in range(1, c_in):
                acc = acc + w2[c][k] * hs[k]
            o_ref[0, c, pl.ds(r0, nrows), :] = jnp.tanh(acc).astype(o_ref.dtype)

    n_full = rows // chunk
    rem = rows % chunk

    if n_full > 0:
        def body(i, carry):
            r0 = pl.multiple_of(i * chunk, chunk)
            do_rows(r0, chunk)
            return carry
        lax.fori_loop(0, n_full, body, 0, unroll=True)
    if rem:
        do_rows(n_full * chunk, rem)   # static tail slice (rows < chunk etc.)


def _pick_rows_tile(rows_total, n_batch, max_rows):
    """Pick the 128-pixel-row tile size (multiple of 8 or the full extent)."""
    if rows_total <= max_rows:
        # v7x: make sure there are >=2 parallel grid steps when batch alone
        # would give only one, so both TensorCores get work.
        if n_batch == 1 and rows_total > 8:
            half = -(-rows_total // 2)
            half = -(-half // 8) * 8
            if half < rows_total:
                return half
        return rows_total
    # Prefer an exact multiple-of-8 divisor (no ragged tail) ...
    t = (max_rows // 8) * 8
    while t >= 64:
        if rows_total % t == 0:
            return t
        t -= 8
    # ... else fall back; Pallas masks the ragged final row-tile.
    return (max_rows // 8) * 8


@functools.partial(jax.jit, static_argnames=("max_rows", "chunk"))
def decode_features(x_nchw, w1, b1, w2, b2, *, max_rows=512, chunk=32):
    """x_nchw: (N, C_in, H, W) f32.  w1: (C_in, C_in, 1, 1), b1: (C_in,),
    w2: (3, C_in, 1, 1), b2: (3,).  Returns (N, 3, H, W) f32."""
    N, C, H, W = x_nchw.shape
    out_c = w2.shape[0]
    HW = H * W

    # NCHW is already channels-then-pixels; these reshapes are free when
    # HW % 128 == 0 (the common case).  Otherwise pad <=127 pixels.
    pad_pix = (-HW) % _LANES
    x = x_nchw.reshape(N, C, HW)
    if pad_pix:
        x = jnp.pad(x, ((0, 0), (0, 0), (0, pad_pix)))
    rows_total = (HW + pad_pix) // _LANES
    x = x.reshape(N, C, rows_total, _LANES)

    rows_tile = _pick_rows_tile(rows_total, N, max_rows)
    n_row_tiles = pl.cdiv(rows_total, rows_tile)

    # PyTorch Conv2d 1x1 weights (out, in, 1, 1) -> flat row-major (out*in,)
    w1_flat = w1.reshape(-1).astype(jnp.float32)
    w2_flat = w2.reshape(-1).astype(jnp.float32)
    b1_flat = b1.astype(jnp.float32)
    b2_flat = b2.astype(jnp.float32)

    kernel = functools.partial(_decode_features_kernel, chunk=chunk, slope=0.4)

    out = pl.pallas_call(
        kernel,
        out_shape=jax.ShapeDtypeStruct((N, out_c, rows_total, _LANES),
                                       x_nchw.dtype),
        grid_spec=pltpu.PrefetchScalarGridSpec(
            num_scalar_prefetch=0,
            grid=(N, n_row_tiles),
            in_specs=[
                pl.BlockSpec((1, C, rows_tile, _LANES),
                             lambda n, t: (n, 0, t, 0)),                 # x
                pl.BlockSpec(memory_space=pltpu.MemorySpace.SMEM),       # w1
                pl.BlockSpec(memory_space=pltpu.MemorySpace.SMEM),       # b1
                pl.BlockSpec(memory_space=pltpu.MemorySpace.SMEM),       # w2
                pl.BlockSpec(memory_space=pltpu.MemorySpace.SMEM),       # b2
            ],
            out_specs=pl.BlockSpec((1, out_c, rows_tile, _LANES),
                                   lambda n, t: (n, 0, t, 0)),
        ),
        compiler_params=pltpu.CompilerParams(
            dimension_semantics=("parallel", "parallel")),
    )(x, w1_flat, b1_flat, w2_flat, b2_flat)

    out = out.reshape(N, out_c, rows_total * _LANES)
    if pad_pix:
        out = out[:, :, :HW]
    return out.reshape(N, out_c, H, W)


def decode_features_ref(x_nchw, w1, b1, w2, b2):
    """Pure-JAX reference mirroring the PyTorch forward (NCHW in/out)."""
    N, C, H, W = x_nchw.shape
    out_c = w2.shape[0]
    w1m = w1.reshape(C, C)
    w2m = w2.reshape(out_c, C)
    h = jnp.einsum("oc,nchw->nohw", w1m, x_nchw) + b1[None, :, None, None]
    h = jnp.where(h > 0, h, 0.4 * h)
    y = jnp.einsum("oc,nchw->nohw", w2m, h) + b2[None, :, None, None]
    return jnp.tanh(y)


if __name__ == "__main__":
    # configs.feats_per_layer = 4 (in_chans != 3 -> non-trivial branch)
    N, C_IN, H, W = 2, 4, 16, 16
    C_OUT = 3

    key = jax.random.PRNGKey(0)
    kx, k1, k2, k3, k4 = jax.random.split(key, 5)

    x = jax.random.normal(kx, (N, C_IN, H, W), dtype=jnp.float32)

    # Deterministic synthetic parameters matching the Conv2d shapes.
    w1 = 0.3 * jax.random.normal(k1, (C_IN, C_IN, 1, 1), dtype=jnp.float32)
    b1 = 0.1 * jax.random.normal(k2, (C_IN,), dtype=jnp.float32)
    w2 = 0.3 * jax.random.normal(k3, (C_OUT, C_IN, 1, 1), dtype=jnp.float32)
    b2 = 0.1 * jax.random.normal(k4, (C_OUT,), dtype=jnp.float32)

    out = decode_features(x, w1, b1, w2, b2)
    out = jax.block_until_ready(out)

    ref = decode_features_ref(x, w1, b1, w2, b2)
    assert out.shape == (N, C_OUT, H, W), out.shape
    assert jnp.allclose(out, ref, atol=1e-5, rtol=1e-5), "mismatch vs reference"

    print("KERNEL_OK")
</pallas_src>

<mosaic_0001>
module attributes {stable_mosaic.version = 11 : i64} {
  func.func @_decode_features_kernel(%arg0: i32, %arg1: i32, %arg2: memref<1x4x2x128xf32, #tpu.memory_space<vmem>>, %arg3: memref<16xf32, #tpu.memory_space<smem>>, %arg4: memref<4xf32, #tpu.memory_space<smem>>, %arg5: memref<12xf32, #tpu.memory_space<smem>>, %arg6: memref<3xf32, #tpu.memory_space<smem>>, %arg7: memref<1x3x2x128xf32, #tpu.memory_space<vmem>>) attributes {dimension_semantics = [#tpu.dimension_semantics<parallel>, #tpu.dimension_semantics<parallel>], iteration_bounds = array<i64: 2, 1>, scalar_prefetch = 0 : i64, scratch_operands = 0 : i64, tpu.core_type = #tpu.core_type<tc>, window_params = [{transform_indices = @transform_0, window_bounds = array<i64: 1, 4, 2, 128>}, {transform_indices = @transform_1, window_bounds = array<i64: 16>}, {transform_indices = @transform_2, window_bounds = array<i64: 4>}, {transform_indices = @transform_3, window_bounds = array<i64: 12>}, {transform_indices = @transform_4, window_bounds = array<i64: 3>}, {transform_indices = @transform_5, window_bounds = array<i64: 1, 3, 2, 128>}]} {
    %c0 = arith.constant 0 : index
    %0 = memref.load %arg3[%c0] : memref<16xf32, #tpu.memory_space<smem>>
    %c1 = arith.constant 1 : index
    %1 = memref.load %arg3[%c1] : memref<16xf32, #tpu.memory_space<smem>>
    %c2 = arith.constant 2 : index
    %2 = memref.load %arg3[%c2] : memref<16xf32, #tpu.memory_space<smem>>
    %c3 = arith.constant 3 : index
    %3 = memref.load %arg3[%c3] : memref<16xf32, #tpu.memory_space<smem>>
    %c4 = arith.constant 4 : index
    %4 = memref.load %arg3[%c4] : memref<16xf32, #tpu.memory_space<smem>>
    %c5 = arith.constant 5 : index
    %5 = memref.load %arg3[%c5] : memref<16xf32, #tpu.memory_space<smem>>
    %c6 = arith.constant 6 : index
    %6 = memref.load %arg3[%c6] : memref<16xf32, #tpu.memory_space<smem>>
    %c7 = arith.constant 7 : index
    %7 = memref.load %arg3[%c7] : memref<16xf32, #tpu.memory_space<smem>>
    %c8 = arith.constant 8 : index
    %8 = memref.load %arg3[%c8] : memref<16xf32, #tpu.memory_space<smem>>
    %c9 = arith.constant 9 : index
    %9 = memref.load %arg3[%c9] : memref<16xf32, #tpu.memory_space<smem>>
    %c10 = arith.constant 10 : index
    %10 = memref.load %arg3[%c10] : memref<16xf32, #tpu.memory_space<smem>>
    %c11 = arith.constant 11 : index
    %11 = memref.load %arg3[%c11] : memref<16xf32, #tpu.memory_space<smem>>
    %c12 = arith.constant 12 : index
    %12 = memref.load %arg3[%c12] : memref<16xf32, #tpu.memory_space<smem>>
    %c13 = arith.constant 13 : index
    %13 = memref.load %arg3[%c13] : memref<16xf32, #tpu.memory_space<smem>>
    %c14 = arith.constant 14 : index
    %14 = memref.load %arg3[%c14] : memref<16xf32, #tpu.memory_space<smem>>
    %c15 = arith.constant 15 : index
    %15 = memref.load %arg3[%c15] : memref<16xf32, #tpu.memory_space<smem>>
    %c0_0 = arith.constant 0 : index
    %16 = memref.load %arg4[%c0_0] : memref<4xf32, #tpu.memory_space<smem>>
    %c1_1 = arith.constant 1 : index
    %17 = memref.load %arg4[%c1_1] : memref<4xf32, #tpu.memory_space<smem>>
    %c2_2 = arith.constant 2 : index
    %18 = memref.load %arg4[%c2_2] : memref<4xf32, #tpu.memory_space<smem>>
    %c3_3 = arith.constant 3 : index
    %19 = memref.load %arg4[%c3_3] : memref<4xf32, #tpu.memory_space<smem>>
    %c0_4 = arith.constant 0 : index
    %20 = memref.load %arg5[%c0_4] : memref<12xf32, #tpu.memory_space<smem>>
    %c1_5 = arith.constant 1 : index
    %21 = memref.load %arg5[%c1_5] : memref<12xf32, #tpu.memory_space<smem>>
    %c2_6 = arith.constant 2 : index
    %22 = memref.load %arg5[%c2_6] : memref<12xf32, #tpu.memory_space<smem>>
    %c3_7 = arith.constant 3 : index
    %23 = memref.load %arg5[%c3_7] : memref<12xf32, #tpu.memory_space<smem>>
    %c4_8 = arith.constant 4 : index
    %24 = memref.load %arg5[%c4_8] : memref<12xf32, #tpu.memory_space<smem>>
    %c5_9 = arith.constant 5 : index
    %25 = memref.load %arg5[%c5_9] : memref<12xf32, #tpu.memory_space<smem>>
    %c6_10 = arith.constant 6 : index
    %26 = memref.load %arg5[%c6_10] : memref<12xf32, #tpu.memory_space<smem>>
    %c7_11 = arith.constant 7 : index
    %27 = memref.load %arg5[%c7_11] : memref<12xf32, #tpu.memory_space<smem>>
    %c8_12 = arith.constant 8 : index
    %28 = memref.load %arg5[%c8_12] : memref<12xf32, #tpu.memory_space<smem>>
    %c9_13 = arith.constant 9 : index
    %29 = memref.load %arg5[%c9_13] : memref<12xf32, #tpu.memory_space<smem>>
    %c10_14 = arith.constant 10 : index
    %30 = memref.load %arg5[%c10_14] : memref<12xf32, #tpu.memory_space<smem>>
    %c11_15 = arith.constant 11 : index
    %31 = memref.load %arg5[%c11_15] : memref<12xf32, #tpu.memory_space<smem>>
    %c0_16 = arith.constant 0 : index
    %32 = memref.load %arg6[%c0_16] : memref<3xf32, #tpu.memory_space<smem>>
    %c1_17 = arith.constant 1 : index
    %33 = memref.load %arg6[%c1_17] : memref<3xf32, #tpu.memory_space<smem>>
    %c2_18 = arith.constant 2 : index
    %34 = memref.load %arg6[%c2_18] : memref<3xf32, #tpu.memory_space<smem>>
    %c0_19 = arith.constant 0 : index
    %c0_20 = arith.constant 0 : index
    %c0_21 = arith.constant 0 : index
    %c0_22 = arith.constant 0 : index
    %35 = vector.load %arg2[%c0_19, %c0_20, %c0_21, %c0_22] : memref<1x4x2x128xf32, #tpu.memory_space<vmem>>, vector<1x1x2x128xf32>
    %36 = vector.shape_cast %35 : vector<1x1x2x128xf32> to vector<2x128xf32>
    %c0_23 = arith.constant 0 : index
    %c1_24 = arith.constant 1 : index
    %c0_25 = arith.constant 0 : index
    %c0_26 = arith.constant 0 : index
    %37 = vector.load %arg2[%c0_23, %c1_24, %c0_25, %c0_26] : memref<1x4x2x128xf32, #tpu.memory_space<vmem>>, vector<1x1x2x128xf32>
    %38 = vector.shape_cast %37 : vector<1x1x2x128xf32> to vector<2x128xf32>
    %c0_27 = arith.constant 0 : index
    %c2_28 = arith.constant 2 : index
    %c0_29 = arith.constant 0 : index
    %c0_30 = arith.constant 0 : index
    %39 = vector.load %arg2[%c0_27, %c2_28, %c0_29, %c0_30] : memref<1x4x2x128xf32, #tpu.memory_space<vmem>>, vector<1x1x2x128xf32>
    %40 = vector.shape_cast %39 : vector<1x1x2x128xf32> to vector<2x128xf32>
    %c0_31 = arith.constant 0 : index
    %c3_32 = arith.constant 3 : index
    %c0_33 = arith.constant 0 : index
    %c0_34 = arith.constant 0 : index
    %41 = vector.load %arg2[%c0_31, %c3_32, %c0_33, %c0_34] : memref<1x4x2x128xf32, #tpu.memory_space<vmem>>, vector<1x1x2x128xf32>
    %42 = vector.shape_cast %41 : vector<1x1x2x128xf32> to vector<2x128xf32>
    %43 = vector.broadcast %0 : f32 to vector<2x128xf32>
    %44 = arith.mulf %43, %36 : vector<2x128xf32>
    %45 = vector.broadcast %16 : f32 to vector<2x128xf32>
    %46 = arith.addf %45, %44 : vector<2x128xf32>
    %47 = vector.broadcast %1 : f32 to vector<2x128xf32>
    %48 = arith.mulf %47, %38 : vector<2x128xf32>
    %49 = arith.addf %46, %48 : vector<2x128xf32>
    %50 = vector.broadcast %2 : f32 to vector<2x128xf32>
    %51 = arith.mulf %50, %40 : vector<2x128xf32>
    %52 = arith.addf %49, %51 : vector<2x128xf32>
    %53 = vector.broadcast %3 : f32 to vector<2x128xf32>
    %54 = arith.mulf %53, %42 : vector<2x128xf32>
    %55 = arith.addf %52, %54 : vector<2x128xf32>
    %cst = arith.constant 4.000000e-01 : f32
    %56 = vector.broadcast %cst : f32 to vector<2x128xf32>
    %57 = arith.mulf %56, %55 : vector<2x128xf32>
    %58 = arith.maximumf %55, %57 : vector<2x128xf32>
    %59 = vector.broadcast %4 : f32 to vector<2x128xf32>
    %60 = arith.mulf %59, %36 : vector<2x128xf32>
    %61 = vector.broadcast %17 : f32 to vector<2x128xf32>
    %62 = arith.addf %61, %60 : vector<2x128xf32>
    %63 = vector.broadcast %5 : f32 to vector<2x128xf32>
    %64 = arith.mulf %63, %38 : vector<2x128xf32>
    %65 = arith.addf %62, %64 : vector<2x128xf32>
    %66 = vector.broadcast %6 : f32 to vector<2x128xf32>
    %67 = arith.mulf %66, %40 : vector<2x128xf32>
    %68 = arith.addf %65, %67 : vector<2x128xf32>
    %69 = vector.broadcast %7 : f32 to vector<2x128xf32>
    %70 = arith.mulf %69, %42 : vector<2x128xf32>
    %71 = arith.addf %68, %70 : vector<2x128xf32>
    %cst_35 = arith.constant 4.000000e-01 : f32
    %72 = vector.broadcast %cst_35 : f32 to vector<2x128xf32>
    %73 = arith.mulf %72, %71 : vector<2x128xf32>
    %74 = arith.maximumf %71, %73 : vector<2x128xf32>
    %75 = vector.broadcast %8 : f32 to vector<2x128xf32>
    %76 = arith.mulf %75, %36 : vector<2x128xf32>
    %77 = vector.broadcast %18 : f32 to vector<2x128xf32>
    %78 = arith.addf %77, %76 : vector<2x128xf32>
    %79 = vector.broadcast %9 : f32 to vector<2x128xf32>
    %80 = arith.mulf %79, %38 : vector<2x128xf32>
    %81 = arith.addf %78, %80 : vector<2x128xf32>
    %82 = vector.broadcast %10 : f32 to vector<2x128xf32>
    %83 = arith.mulf %82, %40 : vector<2x128xf32>
    %84 = arith.addf %81, %83 : vector<2x128xf32>
    %85 = vector.broadcast %11 : f32 to vector<2x128xf32>
    %86 = arith.mulf %85, %42 : vector<2x128xf32>
    %87 = arith.addf %84, %86 : vector<2x128xf32>
    %cst_36 = arith.constant 4.000000e-01 : f32
    %88 = vector.broadcast %cst_36 : f32 to vector<2x128xf32>
    %89 = arith.mulf %88, %87 : vector<2x128xf32>
    %90 = arith.maximumf %87, %89 : vector<2x128xf32>
    %91 = vector.broadcast %12 : f32 to vector<2x128xf32>
    %92 = arith.mulf %91, %36 : vector<2x128xf32>
    %93 = vector.broadcast %19 : f32 to vector<2x128xf32>
    %94 = arith.addf %93, %92 : vector<2x128xf32>
    %95 = vector.broadcast %13 : f32 to vector<2x128xf32>
    %96 = arith.mulf %95, %38 : vector<2x128xf32>
    %97 = arith.addf %94, %96 : vector<2x128xf32>
    %98 = vector.broadcast %14 : f32 to vector<2x128xf32>
    %99 = arith.mulf %98, %40 : vector<2x128xf32>
    %100 = arith.addf %97, %99 : vector<2x128xf32>
    %101 = vector.broadcast %15 : f32 to vector<2x128xf32>
    %102 = arith.mulf %101, %42 : vector<2x128xf32>
    %103 = arith.addf %100, %102 : vector<2x128xf32>
    %cst_37 = arith.constant 4.000000e-01 : f32
    %104 = vector.broadcast %cst_37 : f32 to vector<2x128xf32>
    %105 = arith.mulf %104, %103 : vector<2x128xf32>
    %106 = arith.maximumf %103, %105 : vector<2x128xf32>
    %107 = vector.broadcast %20 : f32 to vector<2x128xf32>
    %108 = arith.mulf %107, %58 : vector<2x128xf32>
    %109 = vector.broadcast %32 : f32 to vector<2x128xf32>
    %110 = arith.addf %109, %108 : vector<2x128xf32>
    %111 = vector.broadcast %21 : f32 to vector<2x128xf32>
    %112 = arith.mulf %111, %74 : vector<2x128xf32>
    %113 = arith.addf %110, %112 : vector<2x128xf32>
    %114 = vector.broadcast %22 : f32 to vector<2x128xf32>
    %115 = arith.mulf %114, %90 : vector<2x128xf32>
    %116 = arith.addf %113, %115 : vector<2x128xf32>
    %117 = vector.broadcast %23 : f32 to vector<2x128xf32>
    %118 = arith.mulf %117, %106 : vector<2x128xf32>
    %119 = arith.addf %116, %118 : vector<2x128xf32>
    %120 = math.tanh %119 : vector<2x128xf32>
    %c0_38 = arith.constant 0 : index
    %c0_39 = arith.constant 0 : index
    %c0_40 = arith.constant 0 : index
    %c0_41 = arith.constant 0 : index
    %121 = vector.load %arg7[%c0_38, %c0_39, %c0_40, %c0_41] : memref<1x3x2x128xf32, #tpu.memory_space<vmem>>, vector<1x1x2x128xf32>
    %122 = vector.shape_cast %121 : vector<1x1x2x128xf32> to vector<2x128xf32>
    %123 = vector.shape_cast %120 : vector<2x128xf32> to vector<1x1x2x128xf32>
    tpu.vector_store %arg7[%c0_38, %c0_39, %c0_40, %c0_41], %123 {strides = array<i32>} : memref<1x3x2x128xf32, #tpu.memory_space<vmem>>, vector<1x1x2x128xf32>,
    %124 = vector.broadcast %24 : f32 to vector<2x128xf32>
    %125 = arith.mulf %124, %58 : vector<2x128xf32>
    %126 = vector.broadcast %33 : f32 to vector<2x128xf32>
    %127 = arith.addf %126, %125 : vector<2x128xf32>
    %128 = vector.broadcast %25 : f32 to vector<2x128xf32>
    %129 = arith.mulf %128, %74 : vector<2x128xf32>
    %130 = arith.addf %127, %129 : vector<2x128xf32>
    %131 = vector.broadcast %26 : f32 to vector<2x128xf32>
    %132 = arith.mulf %131, %90 : vector<2x128xf32>
    %133 = arith.addf %130, %132 : vector<2x128xf32>
    %134 = vector.broadcast %27 : f32 to vector<2x128xf32>
    %135 = arith.mulf %134, %106 : vector<2x128xf32>
    %136 = arith.addf %133, %135 : vector<2x128xf32>
    %137 = math.tanh %136 : vector<2x128xf32>
    %c0_42 = arith.constant 0 : index
    %c1_43 = arith.constant 1 : index
    %c0_44 = arith.constant 0 : index
    %c0_45 = arith.constant 0 : index
    %138 = vector.load %arg7[%c0_42, %c1_43, %c0_44, %c0_45] : memref<1x3x2x128xf32, #tpu.memory_space<vmem>>, vector<1x1x2x128xf32>
    %139 = vector.shape_cast %138 : vector<1x1x2x128xf32> to vector<2x128xf32>
    %140 = vector.shape_cast %137 : vector<2x128xf32> to vector<1x1x2x128xf32>
    tpu.vector_store %arg7[%c0_42, %c1_43, %c0_44, %c0_45], %140 {strides = array<i32>} : memref<1x3x2x128xf32, #tpu.memory_space<vmem>>, vector<1x1x2x128xf32>,
    %141 = vector.broadcast %28 : f32 to vector<2x128xf32>
    %142 = arith.mulf %141, %58 : vector<2x128xf32>
    %143 = vector.broadcast %34 : f32 to vector<2x128xf32>
    %144 = arith.addf %143, %142 : vector<2x128xf32>
    %145 = vector.broadcast %29 : f32 to vector<2x128xf32>
    %146 = arith.mulf %145, %74 : vector<2x128xf32>
    %147 = arith.addf %144, %146 : vector<2x128xf32>
    %148 = vector.broadcast %30 : f32 to vector<2x128xf32>
    %149 = arith.mulf %148, %90 : vector<2x128xf32>
    %150 = arith.addf %147, %149 : vector<2x128xf32>
    %151 = vector.broadcast %31 : f32 to vector<2x128xf32>
    %152 = arith.mulf %151, %106 : vector<2x128xf32>
    %153 = arith.addf %150, %152 : vector<2x128xf32>
    %154 = math.tanh %153 : vector<2x128xf32>
    %c0_46 = arith.constant 0 : index
    %c2_47 = arith.constant 2 : index
    %c0_48 = arith.constant 0 : index
    %c0_49 = arith.constant 0 : index
    %155 = vector.load %arg7[%c0_46, %c2_47, %c0_48, %c0_49] : memref<1x3x2x128xf32, #tpu.memory_space<vmem>>, vector<1x1x2x128xf32>
    %156 = vector.shape_cast %155 : vector<1x1x2x128xf32> to vector<2x128xf32>
    %157 = vector.shape_cast %154 : vector<2x128xf32> to vector<1x1x2x128xf32>
    tpu.vector_store %arg7[%c0_46, %c2_47, %c0_48, %c0_49], %157 {strides = array<i32>} : memref<1x3x2x128xf32, #tpu.memory_space<vmem>>, vector<1x1x2x128xf32>,
    return
  }
  func.func @transform_0(%arg0: i32, %arg1: i32) -> (i32, i32, i32, i32) {
    %c0_i32 = arith.constant 0 : i32
    %c0_i32_0 = arith.constant 0 : i32
    %c0_i32_1 = arith.constant 0 : i32
    return %arg0, %c0_i32, %arg1, %c0_i32_0 : i32, i32, i32, i32
  }
  func.func @transform_1(%arg0: i32, %arg1: i32) -> i32 {
    %c0_i32 = arith.constant 0 : i32
    %c0_i32_0 = arith.constant 0 : i32
    return %c0_i32 : i32
  }
  func.func @transform_2(%arg0: i32, %arg1: i32) -> i32 {
    %c0_i32 = arith.constant 0 : i32
    %c0_i32_0 = arith.constant 0 : i32
    return %c0_i32 : i32
  }
  func.func @transform_3(%arg0: i32, %arg1: i32) -> i32 {
    %c0_i32 = arith.constant 0 : i32
    %c0_i32_0 = arith.constant 0 : i32
    return %c0_i32 : i32
  }
  func.func @transform_4(%arg0: i32, %arg1: i32) -> i32 {
    %c0_i32 = arith.constant 0 : i32
    %c0_i32_0 = arith.constant 0 : i32
    return %c0_i32 : i32
  }
  func.func @transform_5(%arg0: i32, %arg1: i32) -> (i32, i32, i32, i32) {
    %c0_i32 = arith.constant 0 : i32
    %c0_i32_0 = arith.constant 0 : i32
    %c0_i32_1 = arith.constant 0 : i32
    return %arg0, %c0_i32, %arg1, %c0_i32_0 : i32, i32, i32, i32
  }
}

</mosaic_0001>

<bundles_post_ra>
// kernel: decode_features.1
= control target key start
LH: loop header
LB: loop body
LE: loop exit
PB: predicated region body
PF: predicated region fallthrough
CT: control target
= control target key end

     0   :  { %10 = vsyncpa [#allocation3], 0  ;;  %s1033_s0 = inlined_call_operand.vmem [shape: f32[2,4,2,128], index: 0, kind: input, shape index: {}]   ;;  %s1034_s1 = inlined_call_operand.vmem [shape: f32[16], index: 1, kind: input, shape index: {}]   ;;  %s1035_s2 = inlined_call_operand.vmem [shape: f32[4], index: 2, kind: input, shape index: {}]   ;;  %s1036_s3 = inlined_call_operand.vmem [shape: f32[12], index: 3, kind: input, shape index: {}]   ;;  %s1037_s4 = inlined_call_operand.vmem [shape: f32[3], index: 4, kind: input, shape index: {}]   ;;  %s1038_s5 = inlined_call_operand.vmem [shape: f32[2,3,2,128], index: 5, kind: output, shape index: {}]  }
   0x1   :  { %11 = vsyncpa [#allocation5], 0 }
   0x2   :  { %12 = vsyncpa [#allocation8], 0  ;;  %s839_s18 = smov 0   ;;  %s841_s19 = smov 0  }
   0x3   :  { %s843_s20 = smov 0  }
   0x4 LB: > { %s197_s23 = sshll.u32 %s1035_s2, 4  ;;  %s582_s24 = sadd.s32 4294967295, %s803_s20   ;;  %s803_s20 = sphi %s843_s20, %s18_s20   ;;  %s799_s19 = sphi %s841_s19, %s1043_s19   ;;  %s795_s18 = sphi %s839_s18, %s1042_s18   ;;  %s198_s23 = int_to_ptr.vmem [resolvable:$true] %s197_s23 }
   0x5   : > { %p584_p0 = scmp.ge.s32.totalorder %s803_s20, 1  ;;  %p175_p1 = scmp.lt.s32.totalorder %s803_s20, 3 }
   0x6   : > { %p860_p2 = scmp.eq.s32.totalorder %s582_s24, 0  ;;  %s30_s27 = sadd.s32 1, %s799_s19 }
   0x7   : > { %p864_p3 = pnand %p584_p0, %p175_p1  ;;  %s187_s30 = sshll.u32 %s1034_s1, 4  ;;  %s188_s30 = int_to_ptr.vmem [resolvable:$true] %s187_s30 }
   0x8   : > { %p32_p6 = scmp.ge.s32.totalorder %s30_s27, 2  ;;  %s207_s9 = sshll.u32 %s1036_s3, 4  ;;  %s208_s9 = int_to_ptr.vmem [resolvable:$true] %s207_s9 }
   0x9   : > { %p654_p4 = pneg %p864_p3  ;;  %s805_s10 = smov [#allocation4]  }
   0xa   : > { %s1045_s27 = smov (%p32_p6, %s30_s27), 0  ;;  %s806_s11 = smov [#allocation2]  }
   0xb   : > { %p876_p5 = pnand %p860_p2, %p654_p4  ;;  %s807_s12 = smov [#allocation6]  }
   0xc   : > { %s217_s15 = sshll.u32 %s1037_s4, 4  ;;  %s808_s16 = smov [#allocation7]   ;;  %s218_s15 = int_to_ptr.vmem [resolvable:$true] %s217_s15 }
   0xd   : > { %660 = dma.vmem_to_smem (!%p876_p5), %s198_s23, 16, %s805_s10, [#allocation5]  }
   0xe   : > { %657 = dma.vmem_to_smem (!%p876_p5), %s188_s30, 16, %s806_s11, [#allocation3]  }
   0xf   : > { %663 = dma.vmem_to_smem (!%p876_p5), %s208_s9, 16, %s807_s12, [#allocation5]  }
  0x10   : > { %666 = dma.vmem_to_smem (!%p876_p5), %s218_s15, 16, %s808_s16, [#allocation8]  }
  0x11   : > { %241 = sbr.rel (%p864_p3) target bundleno = 86 (0x56), region = 40 }
  0x16   : > { %782 = dma.done.wait (%p860_p2), [#allocation3], 16  }
  0x17   : > { %784 = vsyncadd (%p860_p2), [#allocation3], 4294967280 }
  0x18   : > { %786 = dma.done.wait (%p860_p2), [#allocation5], 32  }
  0x19   : > { %788 = vsyncadd (%p860_p2), [#allocation5], 4294967264 }
  0x1a   : > { %790 = dma.done.wait (%p860_p2), [#allocation8], 16  }
  0x1b   : > { %792 = vsyncadd (%p860_p2), [#allocation8], 4294967280 }
  0x1c   : > { %263 = sfence }
  0x1d   : > { %p292_p7 = scmp.lt.s32.totalorder %s795_s18, 1  ;;  %s911_s17 = sld [smem:[#allocation2]] }
  0x1e   : > { %s913_s21 = sld [smem:[#allocation2 + $0x1]] }
  0x1f   : > { %s1047_s18 = smov (!%p292_p7, %s795_s18), 1  ;;  %s918_s22 = sld [smem:[#allocation2 + $0x2]] }
  0x20   : > { %s920_s23 = sld [smem:[#allocation2 + $0x3]]  ;;  %s636_s30 = sshll.u32 %s1047_s18, 3 }
  0x21   : > { %s922_s24 = sld [smem:[#allocation2 + $0x4]]  ;;  %s299_s11 = scalar_lea.vmem %s1033_s0, %s636_s30 }
  0x22   : > { %s924_s26 = sld [smem:[#allocation2 + $0x5]]  ;;  %v343_v0 = vld [vmem:[%s299_s11] sm:$0x3]  ;;  %v629_v1 = vld [vmem:[%s299_s11 + $0x2] sm:$0x3] }
  0x23   : > { %s926_s25 = sld [smem:[#allocation2 + $0x6]]  ;;  %v630_v2 = vld [vmem:[%s299_s11 + $0x4] sm:$0x3]  ;;  %v350_v3 = vstv %s911_s17  ;;  %v631_v5 = vld [vmem:[%s299_s11 + $0x6] sm:$0x3] }
  0x24   : > { %s928_s28 = sld [smem:[#allocation2 + $0x7]]  ;;  %v354_v4 = vstv %s913_s21  ;;  %v351_v12 = vmul.f32 %v350_v3, %v343_v0 }
  0x25   : > { %s930_s29 = sld [smem:[#allocation2 + $0x8]]  ;;  %v357_v6 = vstv %s918_s22  ;;  %v355_v13 = vmul.f32 %v629_v1, %v354_v4 }
  0x26   : > { %s933_s6 = sld [smem:[#allocation2 + $0x9]]  ;;  %v360_v7 = vstv %s920_s23  ;;  %v358_v16 = vmul.f32 %v630_v2, %v357_v6 }
  0x27   : > { %s935_s7 = sld [smem:[#allocation2 + $0xa]]  ;;  %v365_v8 = vstv %s922_s24  ;;  %v361_v17 = vmul.f32 %v631_v5, %v360_v7 }
  0x28   : > { %s937_s8 = sld [smem:[#allocation2 + $0xb]]  ;;  %v369_v9 = vstv %s924_s26  ;;  %v366_v18 = vmul.f32 %v365_v8, %v343_v0 }
  0x29   : > { %s942_s12 = sld [smem:[#allocation2 + $0xc]]  ;;  %v372_v10 = vstv %s926_s25  ;;  %v370_v20 = vmul.f32 %v629_v1, %v369_v9 }
  0x2a   : > { %s944_s13 = sld [smem:[#allocation2 + $0xd]]  ;;  %v373_v21 = vmul.f32 %v630_v2, %v372_v10  ;;  %v375_v25 = vstv %s928_s28 }
  0x2b   : > { %s946_s14 = sld [smem:[#allocation2 + $0xe]]  ;;  %v380_v11 = vstv %s930_s29  ;;  %v376_v41 = vmul.f32 %v631_v5, %v375_v25 }
  0x2c   : > { %s948_s15 = sld [smem:[#allocation2 + $0xf]]  ;;  %v384_v14 = vstv %s933_s6  ;;  %v381_v22 = vmul.f32 %v380_v11, %v343_v0 }
  0x2d   : > { %s950_s16 = sld [smem:[#allocation4]]  ;;  %v387_v19 = vstv %s935_s7  ;;  %v385_v26 = vmul.f32 %v629_v1, %v384_v14 }
  0x2e   : > { %s954_s30 = sld [smem:[#allocation4 + $0x1]]  ;;  %v388_v30 = vmul.f32 %v630_v2, %v387_v19  ;;  %v390_v34 = vstv %s937_s8 }
  0x2f   : > { %s959_s9 = sld [smem:[#allocation4 + $0x2]]  ;;  %v395_v15 = vstv %s942_s12  ;;  %v391_v46 = vmul.f32 %v631_v5, %v390_v34 }
  0x30   : > { %s964_s10 = sld [smem:[#allocation4 + $0x3]]  ;;  %v399_v23 = vstv %s944_s13  ;;  %v396_v27 = vmul.f32 %v395_v15, %v343_v0 }
  0x31   : > { %s968_s17 = sld [smem:[#allocation6]]  ;;  %v402_v31 = vstv %s946_s14  ;;  %v400_v35 = vmul.f32 %v629_v1, %v399_v23  ;;  %s637_s14 = smul.u32 6, %s1047_s18 }
  0x32   : > { %s971_s21 = sld [smem:[#allocation6 + $0x1]]  ;;  %v405_v39 = vstv %s948_s15  ;;  %v403_v43 = vmul.f32 %v630_v2, %v402_v31 }
  0x33   : > { %s974_s22 = sld [smem:[#allocation6 + $0x2]]  ;;  %v352_v24 = vstv %s950_s16  ;;  %v406_v49 = vmul.f32 %v631_v5, %v405_v39 }
  0x34   : > { %s978_s23 = sld [smem:[#allocation6 + $0x3]]  ;;  %v353_v28 = vadd.f32 %v352_v24, %v351_v12  ;;  %v367_v29 = vstv %s954_s30  ;;  %s307_s30 = scalar_lea.vmem %s1038_s5, %s637_s14 }
  0x35   : > { %s982_s24 = sld [smem:[#allocation7]]  ;;  %v368_v32 = vadd.f32 %v367_v29, %v366_v18  ;;  %v382_v33 = vstv %s959_s9 }
  0x36   : > { %v356_v36 = vadd.f32 %v355_v13, %v353_v28  ;;  %v383_v37 = vadd.f32 %v382_v33, %v381_v22  ;;  %v397_v38 = vstv %s964_s10  ;;  %s988_s26 = sld [smem:[#allocation6 + $0x4]] }
  0x37   : > { %v371_v40 = vadd.f32 %v370_v20, %v368_v32  ;;  %v398_v42 = vadd.f32 %v397_v38, %v396_v27  ;;  %s990_s25 = sld [smem:[#allocation6 + $0x5]]  ;;  %v410_v54 = vstv %s968_s17 }
  0x38   : > { %v359_v44 = vadd.f32 %v358_v16, %v356_v36  ;;  %v386_v45 = vadd.f32 %v385_v26, %v383_v37  ;;  %s992_s28 = sld [smem:[#allocation6 + $0x6]]  ;;  %v414_v57 = vstv %s971_s21 }
  0x39   : > { %v374_v47 = vadd.f32 %v373_v21, %v371_v40  ;;  %v401_v48 = vadd.f32 %v400_v35, %v398_v42  ;;  %s994_s29 = sld [smem:[#allocation6 + $0x7]]  ;;  %v417_v58 = vstv %s974_s22 }
  0x3a   : > { %v362_v50 = vadd.f32 %v361_v17, %v359_v44  ;;  %v389_v51 = vadd.f32 %v388_v30, %v386_v45  ;;  %s996_s6 = sld [smem:[#allocation7 + $0x1]]  ;;  %v420_v61 = vstv %s978_s23 }
  0x3b   : > { %v377_v52 = vadd.f32 %v376_v41, %v374_v47  ;;  %v404_v53 = vadd.f32 %v403_v43, %v401_v48  ;;  %s999_s7 = sld [smem:[#allocation6 + $0x8]]  ;;  %v412_v1 = vstv %s982_s24 }
  0x3c   : > { %v363_v55 = vmul.f32 0.4, %v362_v50  ;;  %v392_v56 = vadd.f32 %v391_v46, %v389_v51  ;;  %s1003_s8 = sld [smem:[#allocation6 + $0x9]]  ;;  %v425_v62 = vstv %s988_s26 }
  0x3d   : > { %v378_v59 = vmul.f32 0.4, %v377_v52  ;;  %v407_v60 = vadd.f32 %v406_v49, %v404_v53  ;;  %s1007_s11 = sld [smem:[#allocation6 + $0xa]]  ;;  %v429_v2 = vstv %s990_s25 }
  0x3e   : > { %v364_v63 = vmax.f32 %v362_v50, %v363_v55  ;;  %v393_v0 = vmul.f32 0.4, %v392_v56  ;;  %s1011_s12 = sld [smem:[#allocation6 + $0xb]]  ;;  %v432_v5 = vstv %s992_s28 }
  0x3f   : > { %v379_v3 = vmax.f32 %v377_v52, %v378_v59  ;;  %v408_v4 = vmul.f32 0.4, %v407_v60  ;;  %v435_v6 = vstv %s994_s29  ;;  %s628_s13 = sld [smem:[#allocation7 + $0x2]] }
  0x40   : > { %v394_v7 = vmax.f32 %v392_v56, %v393_v0  ;;  %v411_v8 = vmul.f32 %v410_v54, %v364_v63  ;;  %v426_v9 = vmul.f32 %v425_v62, %v364_v63  ;;  %v427_v10 = vstv %s996_s6 }
  0x41   : > { %v409_v11 = vmax.f32 %v407_v60, %v408_v4  ;;  %v415_v12 = vmul.f32 %v414_v57, %v379_v3  ;;  %v430_v13 = vmul.f32 %v429_v2, %v379_v3  ;;  %v441_v14 = vstv %s999_s7 }
  0x42   : > { %v413_v15 = vadd.f32 %v412_v1, %v411_v8  ;;  %v418_v16 = vmul.f32 %v417_v58, %v394_v7  ;;  %v428_v17 = vadd.f32 %v427_v10, %v426_v9  ;;  %v433_v18 = vmul.f32 %v432_v5, %v394_v7 }
  0x43   : > { %v421_v19 = vmul.f32 %v420_v61, %v409_v11  ;;  %v436_v20 = vmul.f32 %v435_v6, %v409_v11  ;;  %v442_v21 = vmul.f32 %v441_v14, %v364_v63  ;;  %v445_v22 = vstv %s1003_s8 }
  0x44   : > { %v416_v23 = vadd.f32 %v415_v12, %v413_v15  ;;  %v431_v24 = vadd.f32 %v430_v13, %v428_v17  ;;  %v446_v25 = vmul.f32 %v445_v22, %v379_v3  ;;  %v448_v26 = vstv %s1007_s11 }
  0x45   : > { %v443_v27 = vstv %s628_s13  ;;  %v451_v28 = vstv %s1011_s12  ;;  %v449_v32 = vmul.f32 %v448_v26, %v394_v7 }
  0x46   : > { %v419_v29 = vadd.f32 %v418_v16, %v416_v23  ;;  %v434_v30 = vadd.f32 %v433_v18, %v431_v24  ;;  %v444_v31 = vadd.f32 %v443_v27, %v442_v21  ;;  %v452_v36 = vmul.f32 %v451_v28, %v409_v11 }
  0x48   : > { %v422_v33 = vadd.f32 %v421_v19, %v419_v29  ;;  %v437_v34 = vadd.f32 %v436_v20, %v434_v30  ;;  %v447_v35 = vadd.f32 %v446_v25, %v444_v31 }
  0x4a   : > { %703 = vtanh.f32 %v422_v33  ;;  %v450_v37 = vadd.f32 %v449_v32, %v447_v35 }
  0x4b   : > { %705 = vtanh.f32 %v437_v34 }
  0x4c   : > { %v453_v38 = vadd.f32 %v452_v36, %v450_v37 }
  0x4e   : > { %707 = vtanh.f32 %v453_v38 }
  0x50   : > { %v704_v39 = vpop.eup %703 }
  0x51   : > { %v706_v40 = vpop.eup %705  ;;  %424 = vst [vmem:[%s307_s30] sm:$0x3] %v704_v39 }
  0x52   : > { %632 = vst [vmem:[%s307_s30 + $0x2] sm:$0x3] %v706_v40 }
  0x54   : > { %v708_v41 = vpop.eup %707 }
  0x55   : > { %633 = vst [vmem:[%s307_s30 + $0x4] sm:$0x3] %v708_v41 }
  0x56 PF: > { %s18_s20 = sadd.s32 1, %s803_s20   ;;  %s1042_s18 = smov %s799_s19 }
  0x57   : > { %p15_p8 = scmp.ge.s32.totalorder %s18_s20, 4   ;;  %s1043_s19 = smov %s1045_s27 }
  0x59   :  { %17 = sbr.rel (!%p15_p8) target bundleno = 4 (0x4), region = 92 }
  0x5e   :  { %484 = vsyncpa [#allocation3], 1 }
  0x5f   :  { %486 = vsyncpa [#allocation3 + $0x1], 1 }
  0x60   :  { %487 = vsyncpa [#allocation5], 1 }
  0x61   :  { %488 = vsyncpa [#allocation8], 1 }

</bundles_post_ra>
